<compile_context>
chip_gen: v5e
topology: v5e:2x2
jax: 0.10.0
libtpu: 0.0.40
codegen_flags: <defaults>
</compile_context>

<pallas_src>
import jax
import jax.numpy as jnp
from jax.experimental import pallas as pl
from jax.experimental.pallas import tpu as pltpu


def _mvmlp_kernel(x_ref, w1_ref, shift_ref, w2_ref, b2_ref, out_ref):
    """Fused forward for ALL tasks: two block-diagonal MXU matmuls.

    x_ref:     (B, T*K)        lane-dense flattened input, K = V*S*D
    w1_ref:    (T*K, T*H)      block-diag folded stage-1 weights (+eval BN scale)
    shift_ref: (1, T*H)        folded bias (incl. BN shift), f32
    w2_ref:    (T*H, T*O_PAD)  block-diag tower Linear2, zero-padded to 128 lanes
    b2_ref:    (1, T*O_PAD)    tower Linear2 bias, zero-padded, f32
    out_ref:   (B, T*O_PAD)    single lane-dense output slab
    """
    h = jnp.dot(x_ref[...], w1_ref[...], preferred_element_type=jnp.float32)
    h = jnp.maximum(h + shift_ref[...], 0.0)          # bias + eval-BN folded; ReLU in f32
    # TODO(synk): train-mode Dropout / batch-statistics BatchNorm not implemented;
    # forward uses eval-mode semantics (dropout == identity, BN = running stats).
    o = jnp.dot(h.astype(w2_ref.dtype), w2_ref[...],
                preferred_element_type=jnp.float32)
    out_ref[...] = (o + b2_ref[...]).astype(out_ref.dtype)   # one unmasked store


def fold_params(p, *, param_dtype=jnp.float32):
    """One-time constant folding of the original module parameters.

    h_pre[b, t, :] = sum_{v,s,d} x[b,t,v,s,d]*w_sb[v,d]*w_t1[t,v]*w1[t,s,:]
                     + (sum_v b_sb[v]*w_t1[t,v] + b_t1[t]) * sum_s w1[t,s,:] + b1[t]
    then eval-mode BatchNorm (scale/shift) is folded into the columns/bias, and
    both linear stages are block-diagonalized over tasks.  All folds are done in
    f32; only the final matmul weights are cast to `param_dtype` (f32 or bf16).
    """
    w_sb, b_sb = p["w_sb"], p["b_sb"]                 # (V, D), (V,)
    w_t1, b_t1 = p["w_t1"], p["b_t1"]                 # (T, V), (T,)
    w1, b1 = p["w1"], p["b1"]                         # (T, S, H), (T, H)
    bn_scale, bn_shift = p["bn_scale"], p["bn_shift"] # (T, H)
    w2, b2 = p["w2"], p["b2"]                         # (T, H, O), (T, O)

    T, S, H = w1.shape
    V, D = w_sb.shape
    O = w2.shape[-1]
    K = V * S * D

    # Per-task folded stage-1 weight, flattened over (v, s, d) in exactly the
    # order x.reshape(B, T*K) flattens (zero-copy reshape in the wrapper).
    wf = jnp.einsum("vd,tv,tsh->tvsdh", w_sb, w_t1, w1).reshape(T, K, H)
    z_const = jnp.einsum("v,tv->t", b_sb, w_t1) + b_t1            # (T,)
    shift = z_const[:, None] * jnp.sum(w1, axis=1) + b1           # (T, H)

    # Fold eval-mode BatchNorm into the first matmul.
    wf = wf * bn_scale[:, None, :]
    shift = shift * bn_scale + bn_shift

    # Zero-pad Linear2 output to a 128-lane multiple -> unmasked lane-dense store.
    o_pad = max(128, ((O + 127) // 128) * 128)
    w2p = jnp.zeros((T, H, o_pad), jnp.float32).at[:, :, :O].set(w2)
    b2p = jnp.zeros((T, o_pad), jnp.float32).at[:, :O].set(b2)

    # Block-diagonalize over tasks -> one pair of matmuls for all tasks.
    eye = jnp.eye(T, dtype=jnp.float32)
    w1_bd = jnp.einsum("tkh,ts->tksh", wf, eye).reshape(T * K, T * H)
    w2_bd = jnp.einsum("tho,ts->thso", w2p, eye).reshape(T * H, T * o_pad)
    shift_bd = shift.reshape(1, T * H)
    b2_bd = b2p.reshape(1, T * o_pad)

    return dict(
        w1_bd=w1_bd.astype(param_dtype),   # MXU inputs (f32 or bf16)
        w2_bd=w2_bd.astype(param_dtype),
        shift_bd=shift_bd,                 # elementwise adds stay f32
        b2_bd=b2_bd,
        out_dim=O, o_pad=o_pad, num_tasks=T, k_per_task=K,
    )


def multi_view_mlp_forward(x, folded):
    """x: (bsz, num_tasks, num_views, seq_len, sensor_dim) f32 -> (bsz, T, O)."""
    B, T, V, S, D = x.shape
    K = V * S * D
    w1_bd, w2_bd = folded["w1_bd"], folded["w2_bd"]
    shift_bd, b2_bd = folded["shift_bd"], folded["b2_bd"]
    O, o_pad = folded["out_dim"], folded["o_pad"]
    assert folded["num_tasks"] == T and folded["k_per_task"] == K
    assert w1_bd.shape == (T * K, shift_bd.shape[1])
    assert w2_bd.shape == (shift_bd.shape[1], T * o_pad)

    # Zero-copy reshape (original (b,t,v,s,d) order == fold's flatten order).
    # Cast only matters when bf16 weights are used (matching-dtype MXU path).
    x2d = x.reshape(B, T * K).astype(w1_bd.dtype)

    flops = 2 * B * w1_bd.shape[0] * w1_bd.shape[1] \
          + 2 * B * w2_bd.shape[0] * w2_bd.shape[1]
    bytes_accessed = int(sum(int(a.size) * a.dtype.itemsize
                             for a in (x2d, w1_bd, shift_bd, w2_bd, b2_bd))
                         + B * T * o_pad * 4)
    # Explicit VMEM budget: generous headroom, capped at v7x's scoped default.
    vmem_limit = int(min(32 * 1024 * 1024,
                         max(4 * 1024 * 1024, 4 * bytes_accessed)))

    out = pl.pallas_call(
        _mvmlp_kernel,
        out_shape=jax.ShapeDtypeStruct((B, T * o_pad), jnp.float32),
        in_specs=[pl.BlockSpec(memory_space=pltpu.MemorySpace.VMEM)] * 5,
        out_specs=pl.BlockSpec(memory_space=pltpu.MemorySpace.VMEM),
        compiler_params=pltpu.CompilerParams(vmem_limit_bytes=vmem_limit),
        cost_estimate=pl.CostEstimate(flops=flops, transcendentals=0,
                                      bytes_accessed=bytes_accessed),
    )(x2d, w1_bd, shift_bd, w2_bd, b2_bd)

    # Single slice back to the true output width (one lane-dense kernel store,
    # one wrapper slice — no per-task slicing).
    return out.reshape(B, T, o_pad)[:, :, :O]


def as_task_list(stacked_out):
    """API parity with the PyTorch module: list of per-task (bsz, output_dim)."""
    return [stacked_out[:, t, :] for t in range(stacked_out.shape[1])]


def init_params(key, num_tasks, num_views, seq_len, sensor_dim,
                hidden_dim, output_dim):
    """Original (un-folded) module parameters, eval-mode BatchNorm stats."""
    ks = jax.random.split(key, 12)
    # nn.Linear(sensor_dim, 1) per view.
    w_sb = 0.1 * jax.random.normal(ks[0], (num_views, sensor_dim), jnp.float32)
    b_sb = 0.1 * jax.random.normal(ks[1], (num_views,), jnp.float32)
    # nn.Linear(num_views, 1) per task.
    w_t1 = 0.1 * jax.random.normal(ks[2], (num_tasks, num_views), jnp.float32)
    b_t1 = 0.1 * jax.random.normal(ks[3], (num_tasks,), jnp.float32)
    # Tower Linear(seq_len, hidden), stored pre-transposed (seq_len, hidden).
    w1 = 0.1 * jax.random.normal(ks[4], (num_tasks, seq_len, hidden_dim), jnp.float32)
    b1 = 0.1 * jax.random.normal(ks[5], (num_tasks, hidden_dim), jnp.float32)
    # BatchNorm1d eval-mode affine + running stats, pre-folded to scale/shift.
    eps = 1e-5
    gamma = 1.0 + 0.1 * jax.random.normal(ks[6], (num_tasks, hidden_dim), jnp.float32)
    beta = 0.1 * jax.random.normal(ks[7], (num_tasks, hidden_dim), jnp.float32)
    r_mean = 0.1 * jax.random.normal(ks[8], (num_tasks, hidden_dim), jnp.float32)
    r_var = jax.random.uniform(ks[9], (num_tasks, hidden_dim), jnp.float32, 0.5, 1.5)
    bn_scale = gamma / jnp.sqrt(r_var + eps)
    bn_shift = beta - r_mean * bn_scale
    # Tower Linear(hidden, output_dim), stored pre-transposed (hidden, output).
    w2 = 0.1 * jax.random.normal(ks[10], (num_tasks, hidden_dim, output_dim), jnp.float32)
    b2 = 0.1 * jax.random.normal(ks[11], (num_tasks, output_dim), jnp.float32)
    return dict(w_sb=w_sb, b_sb=b_sb, w_t1=w_t1, b_t1=b_t1, w1=w1, b1=b1,
                bn_scale=bn_scale, bn_shift=bn_shift, w2=w2, b2=b2)


def reference_forward(x, p):
    """Pure-JAX reference mirroring the PyTorch forward (eval mode)."""
    B, T, V, S, D = x.shape
    y = jnp.einsum("btvsd,vd->btsv", x, p["w_sb"]) + p["b_sb"]      # (B, T, S, V)
    outs = []
    for t in range(T):
        z = jnp.einsum("bsv,v->bs", y[:, t], p["w_t1"][t]) + p["b_t1"][t]
        h = z @ p["w1"][t] + p["b1"][t]
        h = h * p["bn_scale"][t] + p["bn_shift"][t]
        h = jnp.maximum(h, 0.0)
        outs.append(h @ p["w2"][t] + p["b2"][t])
    return outs


if __name__ == "__main__":
    bsz, num_tasks, num_views = 2, 2, 3
    seq_len, sensor_dim, hidden_dim, output_dim = 8, 4, 32, 5

    key = jax.random.PRNGKey(0)
    kx, kp = jax.random.split(key)
    x = jax.random.normal(
        kx, (bsz, num_tasks, num_views, seq_len, sensor_dim), jnp.float32)
    params = init_params(kp, num_tasks, num_views, seq_len, sensor_dim,
                         hidden_dim, output_dim)

    ref = jnp.stack(reference_forward(x, params), axis=1)   # (B, T, O)

    # f32 folded weights: tight tolerance vs. the f32 reference.
    out_f32 = multi_view_mlp_forward(x, fold_params(params, param_dtype=jnp.float32))
    out_f32 = jax.block_until_ready(out_f32)
    assert out_f32.shape == (bsz, num_tasks, output_dim)
    assert bool(jnp.allclose(out_f32, ref, atol=1e-4, rtol=1e-4)), \
        "Pallas kernel (f32 weights) mismatch vs JAX reference"

    # bf16 folded weights: halves weight DMA / full-rate MXU path at production
    # sizes; elementwise math stays f32. Looser tolerance vs. the f32 reference.
    out_bf16 = multi_view_mlp_forward(x, fold_params(params, param_dtype=jnp.bfloat16))
    out_bf16 = jax.block_until_ready(out_bf16)
    assert bool(jnp.allclose(out_bf16, ref, atol=5e-2, rtol=5e-2)), \
        "Pallas kernel (bf16 weights) mismatch vs JAX reference"

    # Module-API parity: list of num_tasks arrays of shape (bsz, output_dim).
    outs = as_task_list(out_f32)
    assert len(outs) == num_tasks and all(o.shape == (bsz, output_dim) for o in outs)

    print("KERNEL_OK")
</pallas_src>

<mosaic_0001>
module attributes {stable_mosaic.version = 11 : i64} {
  func.func @_mvmlp_kernel(%arg0: memref<2x192xf32, #tpu.memory_space<vmem>>, %arg1: memref<192x64xf32, #tpu.memory_space<vmem>>, %arg2: memref<1x64xf32, #tpu.memory_space<vmem>>, %arg3: memref<64x256xf32, #tpu.memory_space<vmem>>, %arg4: memref<1x256xf32, #tpu.memory_space<vmem>>, %arg5: memref<2x256xf32, #tpu.memory_space<vmem>>) attributes {dimension_semantics = [], scalar_prefetch = 0 : i64, scratch_operands = 0 : i64, tpu.core_type = #tpu.core_type<tc>} {
    %c0 = arith.constant 0 : index
    %c0_0 = arith.constant 0 : index
    %0 = vector.load %arg0[%c0, %c0_0] : memref<2x192xf32, #tpu.memory_space<vmem>>, vector<2x192xf32>
    %c0_1 = arith.constant 0 : index
    %c0_2 = arith.constant 0 : index
    %1 = vector.load %arg1[%c0_1, %c0_2] : memref<192x64xf32, #tpu.memory_space<vmem>>, vector<192x64xf32>
    %cst = arith.constant dense<0.000000e+00> : vector<2x64xf32>
    %2 = tpu.matmul %0, %1, %cst {dimension_numbers = #tpu.dot_dimension_numbers<[1], [0], [0], [1], [0, 0, 1, 1], [], []>} : vector<2x192xf32>, vector<192x64xf32>, vector<2x64xf32> -> vector<2x64xf32>
    %c0_3 = arith.constant 0 : index
    %c0_4 = arith.constant 0 : index
    %3 = vector.load %arg2[%c0_3, %c0_4] : memref<1x64xf32, #tpu.memory_space<vmem>>, vector<1x64xf32>
    %4 = vector.broadcast %3 : vector<1x64xf32> to vector<2x64xf32>
    %5 = arith.addf %2, %4 : vector<2x64xf32>
    %cst_5 = arith.constant 0.000000e+00 : f32
    %6 = vector.broadcast %cst_5 : f32 to vector<2x64xf32>
    %7 = arith.maximumf %5, %6 : vector<2x64xf32>
    %c0_6 = arith.constant 0 : index
    %c0_7 = arith.constant 0 : index
    %8 = vector.load %arg3[%c0_6, %c0_7] : memref<64x256xf32, #tpu.memory_space<vmem>>, vector<64x256xf32>
    %cst_8 = arith.constant dense<0.000000e+00> : vector<2x256xf32>
    %9 = tpu.matmul %7, %8, %cst_8 {dimension_numbers = #tpu.dot_dimension_numbers<[1], [0], [0], [1], [0, 0, 1, 1], [], []>} : vector<2x64xf32>, vector<64x256xf32>, vector<2x256xf32> -> vector<2x256xf32>
    %c0_9 = arith.constant 0 : index
    %c0_10 = arith.constant 0 : index
    %10 = vector.load %arg4[%c0_9, %c0_10] : memref<1x256xf32, #tpu.memory_space<vmem>>, vector<1x256xf32>
    %11 = vector.broadcast %10 : vector<1x256xf32> to vector<2x256xf32>
    %12 = arith.addf %9, %11 : vector<2x256xf32>
    %c0_11 = arith.constant 0 : index
    %c0_12 = arith.constant 0 : index
    %13 = vector.load %arg5[%c0_11, %c0_12] : memref<2x256xf32, #tpu.memory_space<vmem>>, vector<2x256xf32>
    tpu.vector_store %arg5[%c0_11, %c0_12], %12 {strides = array<i32>} : memref<2x256xf32, #tpu.memory_space<vmem>>, vector<2x256xf32>,
    return
  }
}

</mosaic_0001>

<bundles_post_ra>
// kernel: tpu_custom_call.1
= control target key start
LH: loop header
LB: loop body
LE: loop exit
PB: predicated region body
PF: predicated region fallthrough
CT: control target
= control target key end

     0   :  { %s384_s0 = inlined_call_operand.vmem [shape: f32[2,192], index: 0, kind: input, shape index: {}]   ;;  %s385_s1 = inlined_call_operand.vmem [shape: f32[192,64], index: 1, kind: input, shape index: {}]   ;;  %s386_s2 = inlined_call_operand.vmem [shape: f32[1,64], index: 2, kind: input, shape index: {}]   ;;  %s387_s3 = inlined_call_operand.vmem [shape: f32[64,256], index: 3, kind: input, shape index: {}]   ;;  %s388_s4 = inlined_call_operand.vmem [shape: f32[1,256], index: 4, kind: input, shape index: {}]   ;;  %s389_s5 = inlined_call_operand.hbm [shape: f32[2,256], index: 5, kind: output, shape index: {}]  }
   0x1   :  { %v37_v0 = vld [vmem:[%s385_s1 + $0x78] sm:$0xff]  ;;  %v36_v1 = vld [vmem:[%s385_s1 + $0x70] sm:$0xff]  ;;  %v35_v2 = vld [vmem:[%s385_s1 + $0x68] sm:$0xff] }
   0x2   :  { %58 = vmatpush.msra.mxu0 %v37_v0  ;;  %v45_v3 = vld [vmem:[%s385_s1 + $0xb8] sm:$0xff]  ;;  %v34_v4 = vld [vmem:[%s385_s1 + $0x60] sm:$0xff]  ;;  %v44_v5 = vld [vmem:[%s385_s1 + $0xb0] sm:$0xff] }
   0x3   :  { %86 = vmatpush.msra.mxu1 %v45_v3  ;;  %v43_v6 = vld [vmem:[%s385_s1 + $0xa8] sm:$0xff]  ;;  %v33_v7 = vld [vmem:[%s385_s1 + $0x58] sm:$0xff]  ;;  %v42_v8 = vld [vmem:[%s385_s1 + $0xa0] sm:$0xff] }
   0x4   :  { %59 = vmatpush.msra.mxu0 %v36_v1  ;;  %v21_v9 = vld [vmem:[%s384_s0] sm:$0xf]  ;;  %v32_v10 = vld [vmem:[%s385_s1 + $0x50] sm:$0xff]  ;;  %v114_v12 = vld [vmem:[%s387_s3 + $0x78] sm:$0xff] }
   0x5   :  { %87 = vmatpush.msra.mxu1 %v44_v5  ;;  %51 = vst [vmem:[#allocation1] ss:$4 sm:$0xff] %v21_v9  ;;  %v113_v11 = vld [vmem:[%s387_s3 + $0x70] sm:$0xff]  ;;  %v41_v13 = vld [vmem:[%s385_s1 + $0x98] sm:$0xff]  ;;  %v111_v14 = vld [vmem:[%s387_s3 + $0x60] sm:$0xff]  ;;  %152 = vmatpush.msra.mxu3 %v114_v12 }
   0x6   :  { %60 = vmatpush.msra.mxu0 %v35_v2  ;;  %132 = vmatpush.msra.mxu2 %v113_v11  ;;  %v112_v15 = vld [vmem:[%s387_s3 + $0x68] sm:$0xff]  ;;  %v40_v17 = vld [vmem:[%s385_s1 + $0x90] sm:$0xff]  ;;  %v110_v19 = vld [vmem:[%s387_s3 + $0x58] sm:$0xff] }
   0x7   :  { %88 = vmatpush.msra.mxu1 %v43_v6  ;;  %v31_v16 = vld [vmem:[%s385_s1 + $0x48] sm:$0xff]  ;;  %v109_v18 = vld [vmem:[%s387_s3 + $0x50] sm:$0xff] }
   0x8   :  { %61 = vmatpush.msra.mxu0 %v34_v4  ;;  %133 = vmatpush.msra.mxu2 %v111_v14 }
   0x9   :  { %89 = vmatpush.msra.mxu1 %v42_v8 }
   0xa   :  { %62 = vmatpush.msra.mxu0 %v33_v7 }
   0xc   :  { %63 = vmatpush.msra.mxu0 %v32_v10 }
   0xd   :  { %10 = vsyncpa [#allocation3], 0  ;;  %v30_v20 = vld [vmem:[%s385_s1 + $0x40] sm:$0xff]  ;;  %90 = vmatpush.msra.mxu1 %v41_v13  ;;  %153 = vmatpush.msra.mxu3 %v112_v15  ;;  %v39_v22 = vld [vmem:[%s385_s1 + $0x88] sm:$0xff]  ;;  %vm55_vm0 = vcmask 523264   ;;  %s178_s27 = sshll.u32 %s389_s5, 4  ;;  %s179_s27 = int_to_ptr.hbm [resolvable:$true] %s178_s27 }
   0xe   :  { %v107_v21 = vld [vmem:[%s387_s3 + $0x40] sm:$0xff]  ;;  %64 = vmatpush.msra.mxu0 %v31_v16  ;;  %134 = vmatpush.msra.mxu2 %v109_v18  ;;  %v108_v23 = vld [vmem:[%s387_s3 + $0x48] sm:$0xff]  ;;  %v29_v24 = vld [vmem:[%s385_s1 + $0x38] sm:$0xff]  ;;  %vm167_vm1 = vcmask 1041408  }
   0xf   :  { %91 = vmatpush.msra.mxu1 %v40_v17  ;;  %154 = vmatpush.msra.mxu3 %v110_v19  ;;  %v38_v25 = vld [vmem:[%s385_s1 + $0x80] sm:$0xff]  ;;  %v28_v26 = vld [vmem:[%s385_s1 + $0x30] sm:$0xff]  ;;  %v53_v27 = vld.sshfl [vmem:[#allocation1 + $0x8] sm:$0xff pattern:$0x73625140] }
  0x10   :  { %65 = vmatpush.msra.mxu0 %v30_v20  ;;  %135 = vmatpush.msra.mxu2 %v107_v21  ;;  %v27_v28 = vld [vmem:[%s385_s1 + $0x28] sm:$0xff]  ;;  %v26_v29 = vld [vmem:[%s385_s1 + $0x20] sm:$0xff]  ;;  %v25_v30 = vld [vmem:[%s385_s1 + $0x18] sm:$0xff] }
  0x11   :  { %92 = vmatpush.msra.mxu1 %v39_v22  ;;  %155 = vmatpush.msra.mxu3 %v108_v23  ;;  %v24_v31 = vld [vmem:[%s385_s1 + $0x10] sm:$0xff]  ;;  %v23_v32 = vld [vmem:[%s385_s1 + $0x8] sm:$0xff]  ;;  %v22_v33 = vld [vmem:[%s385_s1] sm:$0xff] }
  0x12   :  { %66 = vmatpush.msra.mxu0 %v29_v24  ;;  %v52_v34 = vld.sshfl [vmem:[#allocation1] sm:$0xff pattern:$0x73625140]  ;;  %v105_v35 = vld [vmem:[%s387_s3 + $0x30] sm:$0xff]  ;;  %v106_v36 = vld [vmem:[%s387_s3 + $0x38] sm:$0xff] }
  0x13   :  { %93 = vmatpush.msra.mxu1 %v38_v25  ;;  %136 = vmatpush.msra.mxu2 %v105_v35  ;;  %v103_v37 = vld [vmem:[%s387_s3 + $0x20] sm:$0xff]  ;;  %v104_v38 = vld [vmem:[%s387_s3 + $0x28] sm:$0xff]  ;;  %v101_v39 = vld [vmem:[%s387_s3 + $0x10] sm:$0xff] }
  0x14   :  { %67 = vmatpush.msra.mxu0 %v28_v26  ;;  %187 = vmatmul.msk.f32.vlgmr.msra.gmra.mxu1 %vm55_vm0, %v53_v27  ;;  %v102_v40 = vld [vmem:[%s387_s3 + $0x18] sm:$0xff]  ;;  %v99_v41 = vld [vmem:[%s387_s3] sm:$0xff]  ;;  %v100_v42 = vld [vmem:[%s387_s3 + $0x8] sm:$0xff]  ;;  %s218_s3 = smov [#allocation2]  }
  0x15   :  { %156 = vmatpush.msra.mxu3 %v106_v36  ;;  %137 = vmatpush.msra.mxu2 %v103_v37  ;;  %v191_v43 = vld [vmem:[%s386_s2] ss:$0 sm:$0xff]  ;;  %s176_s2 = sshll.u32 %s218_s3, 4  ;;  %s177_s2 = int_to_ptr.vmem [resolvable:$true] %s176_s2 }
  0x16   :  { %68 = vmatpush.msra.mxu0 %v27_v28  ;;  %v115_v49 = vld [vmem:[%s388_s4] sm:$0x3] }
  0x17   :  { %157 = vmatpush.msra.mxu3 %v104_v38  ;;  %138 = vmatpush.msra.mxu2 %v101_v39  ;;  %v118_v50 = vperm.slane %v115_v49, 1  ;;  %v117_v51 = vperm.slane %v115_v49, 0 }
  0x18   :  { %69 = vmatpush.msra.mxu0 %v26_v29 }
  0x19   :  { %158 = vmatpush.msra.mxu3 %v102_v40  ;;  %139 = vmatpush.msra.mxu2 %v99_v41 }
  0x1a   :  { %70 = vmatpush.msra.mxu0 %v25_v30 }
  0x1b   :  { %159 = vmatpush.msra.mxu3 %v100_v42 }
  0x1c   :  { %71 = vmatpush.msra.mxu0 %v24_v31 }
  0x1e   :  { %72 = vmatpush.msra.mxu0 %v23_v32 }
  0x20   :  { %73 = vmatpush.msra.mxu0 %v22_v33 }
  0x21   :  { %74 = vmatmul.f32.vlgmr.msra.gmra.mxu0 %v52_v34 }
  0x91   :  { %v95_v45 = vpop.f32.mrf.mxu1 }
  0x9e   :  { %v75_v44 = vpop.f32.mrf.mxu0 }
  0x9f   :  { %v76_v46 = vadd.f32 %v191_v43, %v75_v44 }
  0xa1   :  { %v96_v47 = vadd.f32 %v95_v45, %v76_v46 }
  0xa3   :  { %v98_v48 = vmax.f32 %v96_v47, 0.0 }
  0xa5   :  { %188 = vmatmul.msk.f32.vlgmr.msra.gmra.mxu2 %vm55_vm0, %v98_v48  ;;  %189 = vmatmul.msk.f32.vlgmr.msra.gmra.mxu3 %vm55_vm0, %v98_v48 }
 0x128   :  { %v141_v52 = vpop.f32.mrf.mxu2  ;;  %v161_v53 = vpop.f32.mrf.mxu3 }
 0x129   :  { %v162_v54 = vadd.f32 %v161_v53, %v118_v50  ;;  %v142_v55 = vadd.f32 %v141_v52, %v117_v51 }
 0x12b   :  { %v166_v56 = vrot.slane %v162_v54, 6 }
 0x12d   :  { %v168_v57 = vsel %vm167_vm1, %v142_v55, %v166_v56 }
 0x12e   :  { %170 = vst [vmem:[#allocation2] sm:$0xf] %v168_v57 }
 0x12f   :  { %181 = dma.vmem_to_hbm [thread:$0]  %s177_s2, 64, %s179_s27, [#allocation3]  }
 0x130   :  { %216 = dma.done.wait [#allocation3], 64  }
 0x131   :  { %217 = vsyncadd [#allocation3], 4294967232 }
 0x132   :  { %186 = vsyncpa [#allocation3], 1 }

</bundles_post_ra>
